<compile_context>
chip_gen: v7x
topology: tpu7x:2x2x1
jax: 0.10.0
libtpu: 0.0.40
codegen_flags: <defaults>
</compile_context>

<pallas_src>
import jax
import jax.numpy as jnp
from jax.experimental import pallas as pl
from jax.experimental.pallas import tpu as pltpu


def _softmax_mul_kernel(x_ref, a_ref, o_ref):
    # x_ref/a_ref/o_ref: (C, TILE_N) tiles; softmax over axis 0 (channels),
    # independently per lane (spatial position).
    xf = x_ref[...].astype(jnp.float32)
    a = a_ref[...]

    m = jnp.max(xf, axis=0, keepdims=True)      # per-position channel max (XLU)
    e = jnp.exp(xf - m)                          # EUP
    s = jnp.sum(e, axis=0, keepdims=True)        # per-position channel sum (XLU)
    p = e / s                                    # exact normalize (mem-bound => free)

    if o_ref.dtype == jnp.float32:
        o_ref[...] = p * a.astype(jnp.float32)
    else:
        # Narrow-dtype tail: normalized values are in [0,1]; doing the last
        # multiply in bf16/f16 is accuracy-neutral and cheaper on v6e/v7x.
        o_ref[...] = p.astype(o_ref.dtype) * a.astype(o_ref.dtype)


def _pick_lane_tile(n, c, itemsize, b, *, budget_bytes=6 * 1024 * 1024,
                    min_total_tiles=4):
    """Lane-tile size: multiple of 128, byte-budget bound, megacore-shardable.

    The double-buffered working set per grid step is
        3 arrays x 2 buffers x (C x tn x itemsize)  ~= budget_bytes,
    which stays well under the scoped-VMEM defaults on v5e/v6e/v7x.
    """
    per_array = budget_bytes // 6                       # one block of one array
    tn = (per_array // max(c * itemsize, 1)) // 128 * 128
    n_pad = -(-n // 128) * 128                          # ceil to lane multiple
    tn = max(128, min(tn, n_pad))

    # Keep at least `min_total_tiles` grid steps so the ("parallel","parallel")
    # grid can shard across v7x's 2 TensorCores even when B is 1 or 2.
    desired_n_tiles = max(1, -(-min_total_tiles // max(b, 1)))
    if desired_n_tiles > 1:
        cap = max(128, (-(-n // desired_n_tiles)) // 128 * 128)
        tn = min(tn, cap)
    return tn


def multiply_forward(x, attention_x):
    """softmax(x, dim=1) * attention_x for NCHW inputs (fused Pallas kernel)."""
    assert x.shape == attention_x.shape, "x and attentionX must have equal shapes"
    B, C, H, W = x.shape
    N = H * W
    itemsize = jnp.dtype(x.dtype).itemsize

    # Free reshapes (no data movement): NCHW -> (B, C, H*W). Channels land on
    # sublanes (reduction fully inside a block), spatial axis is lane-dense.
    x3 = x.reshape(B, C, N)
    a3 = attention_x.reshape(B, C, N)

    tn = _pick_lane_tile(N, C, itemsize, B)
    grid = (B, pl.cdiv(N, tn))                  # ragged tail block is masked

    blk = (pl.Squeezed(), C, tn)                # kernel sees clean (C, tn) refs
    idx = lambda b, j: (b, 0, j)

    cost = pl.CostEstimate(
        flops=5 * B * C * N,
        transcendentals=B * C * N,
        bytes_accessed=3 * B * C * N * itemsize,
    )

    out3 = pl.pallas_call(
        _softmax_mul_kernel,
        out_shape=jax.ShapeDtypeStruct((B, C, N), x.dtype),
        grid=grid,
        in_specs=[
            pl.BlockSpec(blk, idx),
            pl.BlockSpec(blk, idx),
        ],
        out_specs=pl.BlockSpec(blk, idx),
        compiler_params=pltpu.CompilerParams(
            dimension_semantics=("parallel", "parallel")),
        cost_estimate=cost,
    )(x3, a3)

    # Free reshape back to NCHW.
    return out3.reshape(B, C, H, W)


if __name__ == "__main__":
    key = jax.random.PRNGKey(0)
    kx, ka = jax.random.split(key)

    B, C, H, W = 2, 4, 16, 16
    x = jax.random.normal(kx, (B, C, H, W), dtype=jnp.float32)
    attention_x = jax.random.uniform(ka, (B, C, H, W), dtype=jnp.float32)

    out = multiply_forward(x, attention_x)
    out = jax.block_until_ready(out)

    # Reference: torch nn.Softmax() on 4D -> softmax over dim=1 (channels).
    ref = jax.nn.softmax(x, axis=1) * attention_x
    assert out.shape == (B, C, H, W)
    assert jnp.allclose(out, ref, atol=1e-5, rtol=1e-4), "mismatch vs reference"

    print("KERNEL_OK")
</pallas_src>

<mosaic_0001>
module attributes {stable_mosaic.version = 11 : i64} {
  func.func @_softmax_mul_kernel(%arg0: i32, %arg1: i32, %arg2: memref<1x4x128xf32, #tpu.memory_space<vmem>>, %arg3: memref<1x4x128xf32, #tpu.memory_space<vmem>>, %arg4: memref<1x4x128xf32, #tpu.memory_space<vmem>>) attributes {dimension_semantics = [#tpu.dimension_semantics<parallel>, #tpu.dimension_semantics<parallel>], iteration_bounds = array<i64: 2, 2>, scalar_prefetch = 0 : i64, scratch_operands = 0 : i64, tpu.core_type = #tpu.core_type<tc>, window_params = [{transform_indices = @transform_0, window_bounds = array<i64: 1, 4, 128>}, {transform_indices = @transform_1, window_bounds = array<i64: 1, 4, 128>}, {transform_indices = @transform_2, window_bounds = array<i64: 1, 4, 128>}]} {
    %c0 = arith.constant 0 : index
    %c0_0 = arith.constant 0 : index
    %c0_1 = arith.constant 0 : index
    %0 = vector.load %arg2[%c0, %c0_0, %c0_1] : memref<1x4x128xf32, #tpu.memory_space<vmem>>, vector<1x4x128xf32>
    %1 = vector.shape_cast %0 : vector<1x4x128xf32> to vector<4x128xf32>
    %c0_2 = arith.constant 0 : index
    %c0_3 = arith.constant 0 : index
    %c0_4 = arith.constant 0 : index
    %2 = vector.load %arg3[%c0_2, %c0_3, %c0_4] : memref<1x4x128xf32, #tpu.memory_space<vmem>>, vector<1x4x128xf32>
    %3 = vector.shape_cast %2 : vector<1x4x128xf32> to vector<4x128xf32>
    %cst = arith.constant dense<0xFF800000> : vector<128xf32>
    %4 = vector.multi_reduction <maximumf>, %1, %cst [0] : vector<4x128xf32> to vector<128xf32>
    %5 = vector.shape_cast %4 : vector<128xf32> to vector<1x128xf32>
    %6 = vector.broadcast %5 : vector<1x128xf32> to vector<4x128xf32>
    %7 = arith.subf %1, %6 : vector<4x128xf32>
    %8 = math.exp %7 : vector<4x128xf32>
    %cst_5 = arith.constant dense<0.000000e+00> : vector<128xf32>
    %9 = vector.multi_reduction <add>, %8, %cst_5 [0] : vector<4x128xf32> to vector<128xf32>
    %10 = vector.shape_cast %9 : vector<128xf32> to vector<1x128xf32>
    %11 = vector.broadcast %10 : vector<1x128xf32> to vector<4x128xf32>
    %12 = arith.divf %8, %11 : vector<4x128xf32>
    %13 = arith.mulf %12, %3 : vector<4x128xf32>
    %c0_6 = arith.constant 0 : index
    %c0_7 = arith.constant 0 : index
    %c0_8 = arith.constant 0 : index
    %14 = vector.load %arg4[%c0_6, %c0_7, %c0_8] : memref<1x4x128xf32, #tpu.memory_space<vmem>>, vector<1x4x128xf32>
    %15 = vector.shape_cast %14 : vector<1x4x128xf32> to vector<4x128xf32>
    %16 = vector.shape_cast %13 : vector<4x128xf32> to vector<1x4x128xf32>
    tpu.vector_store %arg4[%c0_6, %c0_7, %c0_8], %16 {strides = array<i32>} : memref<1x4x128xf32, #tpu.memory_space<vmem>>, vector<1x4x128xf32>,
    return
  }
  func.func @transform_0(%arg0: i32, %arg1: i32) -> (i32, i32, i32) {
    %c0_i32 = arith.constant 0 : i32
    %c0_i32_0 = arith.constant 0 : i32
    return %arg0, %c0_i32, %arg1 : i32, i32, i32
  }
  func.func @transform_1(%arg0: i32, %arg1: i32) -> (i32, i32, i32) {
    %c0_i32 = arith.constant 0 : i32
    %c0_i32_0 = arith.constant 0 : i32
    return %arg0, %c0_i32, %arg1 : i32, i32, i32
  }
  func.func @transform_2(%arg0: i32, %arg1: i32) -> (i32, i32, i32) {
    %c0_i32 = arith.constant 0 : i32
    %c0_i32_0 = arith.constant 0 : i32
    return %arg0, %c0_i32, %arg1 : i32, i32, i32
  }
}

</mosaic_0001>

<bundles_post_ra>
// kernel: tpu_custom_call.1
= control target key start
LH: loop header
LB: loop body
LE: loop exit
PB: predicated region body
PF: predicated region fallthrough
CT: control target
= control target key end

     0   :  { %7 = vsyncpa [#allocation3], 0  ;;  %s906_s0 = inlined_call_operand.hbm [shape: f32[2,4,256], index: 0, kind: input, shape index: {}]   ;;  %s907_s1 = inlined_call_operand.hbm [shape: f32[2,4,256], index: 1, kind: input, shape index: {}]   ;;  %s908_s2 = inlined_call_operand.hbm [shape: f32[2,4,256], index: 2, kind: output, shape index: {}]  }
   0x1   :  { %9 = vsyncpa [#allocation3 + $0x1], 0 }
   0x2   :  { %10 = vsyncpa [#allocation6], 0 }
   0x3   :  { %12 = vsyncpa [#allocation6 + $0x1], 0 }
   0x4   :  { %13 = vsyncpa [#allocation4], 0 }
   0x5   :  { %15 = vsyncpa [#allocation4 + $0x1], 0  ;;  %s656_s9 = smov 0   ;;  %s658_s10 = smov 0  }
   0x6   :  { %s660_s11 = smov 0   ;;  %s662_s12 = smov 0  }
   0x7   :  { %s664_s13 = smov 0   ;;  %s666_s14 = smov 0  }
   0x8   :  { %s668_s15 = smov 0   ;;  %s670_s16 = smov 0  }
   0x9 LB: > { %s368_s17 = sadd.s32 4294967295, %s636_s16   ;;  %s369_s18 = sadd.s32 4294967294, %s636_s16   ;;  %s636_s16 = sphi %s670_s16, %s21_s16   ;;  %s632_s15 = sphi %s668_s15, %s931_s15   ;;  %s628_s14 = sphi %s666_s14, %s930_s14   ;;  %s624_s13 = sphi %s664_s13, %s929_s13   ;;  %s620_s12 = sphi %s662_s12, %s928_s12   ;;  %s616_s11 = sphi %s660_s11, %s927_s11   ;;  %s612_s10 = sphi %s658_s10, %s926_s10   ;;  %s608_s9 = sphi %s656_s9, %s925_s9  }
   0xa   : > { %s30_s19 = sadd.s32 1, %s628_s14  ;;  %s33_s20 = sadd.s32 1, %s632_s15 }
   0xb   : > { %p31_p0 = scmp.ge.s32.totalorder %s30_s19, 2  ;;  %s42_s21 = sadd.s32 1, %s616_s11 }
   0xc   : > { %p49_p1 = scmp.ne.s32.totalorder %s616_s11, %s612_s10  ;;  %p50_p2 = scmp.eq.s32.totalorder %s636_s16, 0 }
   0xd   : > { %s933_s19 = smov (%p31_p0, %s30_s19), 0  ;;  %s935_s20 = smov (!%p31_p0, %s33_s20), %s632_s15 }
   0xe   : > { %s38_s22 = ssub.s32 %s628_s14, %s933_s19  ;;  %p709_p3 = por %p50_p2, %p49_p1 }
   0xf   : > { %p35_p4 = scmp.ge.s32.totalorder %s935_s20, 2  ;;  %p55_p5 = scmp.ne.s32.totalorder %s612_s10, %s608_s9 }
  0x10   : > { %p56_p6 = scmp.eq.s32.totalorder %s368_s17, 0  ;;  %p109_p7 = scmp.eq.s32.totalorder %s368_s17, 3 }
  0x11   : > { %s937_s20 = smov (%p35_p4, %s935_s20), 0  ;;  %p115_p10 = scmp.eq.s32.totalorder %s369_s18, 3 }
  0x12   : > { %p717_p8 = por %p56_p6, %p55_p5  ;;  %p721_p9 = por %p109_p7, %p49_p1 }
  0x13   : > { %s37_s26 = ssub.s32 %s632_s15, %s937_s20  ;;  %p727_p12 = por %p115_p10, %p55_p5 }
  0x14   : > { %s913_s24 = scalar_select %p717_p8, 1, 0 }
  0x15   : > { %s914_s25 = scalar_select %p721_p9, 1, 0 }
  0x16   : > { %s39_s27 = sor.u32 %s38_s22, %s37_s26  ;;  %p404_p13 = scmp.lt.s32.totalorder %s636_s16, 4 }
  0x17   : > { %p40_p11 = scmp.eq.s32.totalorder %s39_s27, 0  ;;  %s733_s29 = sand.u32 1, %s616_s11  }
  0x18   : > { %s915_s28 = scalar_select %p727_p12, 1, 0 }
  0x19   : > { %s736_s30 = scalar_select %p40_p11, %s616_s11, %s42_s21  }
  0x1a   : > { %s909_s3 = sshll.u32 %s733_s29, 2  ;;  %s373_s4 = sshll.u32 %s632_s15, 1 }
  0x1b   : > { %s741_s5 = sadd.s32 %s628_s14, %s373_s4  ;;  %s139_s6 = scalar_lea.vmem [#allocation2], %s909_s3 }
  0x1c   : > { %s148_s7 = sshll.u32 %s139_s6, 4  ;;  %s374_s8 = sshll.u32 %s741_s5, 6  ;;  %s746_s7 = int_to_ptr.vmem [resolvable:$true] %s148_s7 }
  0x1d   : > { %s753_s22 = scalar_lea.hbm %s906_s0, %s374_s8  ;;  %p757_p0 = pnand %p404_p13, %p709_p3 }
  0x1e   : > { %s136_s26 = scalar_lea.sflag [#allocation3], %s733_s29  ;;  %s474_s27 = scalar_lea.hbm %s753_s22, 64 }
  0x1f   : > { %p475_p4 = scmp.ne.s32.totalorder %s753_s22, %s474_s27  ;;  %p476_p5 = pneg %p757_p0 }
  0x20   : > { %s479_s6 = scalar_lea.hbm %s906_s0, 256  ;;  %p480_p3 = scmp.lt.u32.totalorder %s753_s22, %s906_s0 }
  0x21   : > { %p477_p6 = pnand %p476_p5, %p475_p4  ;;  %p481_p10 = scmp.lt.u32.totalorder %s479_s6, %s474_s27 }
  0x22   : > { %p483_p13 = scmp.lt.u32.totalorder %s474_s27, %s753_s22 }
  0x23   : > { %p478_p7 = pneg %p477_p6  ;;  %p482_p11 = por %p481_p10, %p480_p3 }
  0x25   : > { %p484_p1 = por %p483_p13, %p482_p11 }
  0x27   : > { %p485_p2 = pnand %p484_p1, %p478_p7 }
  0x29   : > { %488 = shalt.err (!%p485_p2)
}
  0x2a   : > { %s489_s3 = scalar_lea.vmem %s746_s7, 64  ;;  %s638_s23 = smov [#allocation2]  }
  0x2b   : > { %p490_p4 = scmp.ne.s32.totalorder %s746_s7, %s489_s3  ;;  %s494_s4 = sshll.u32 %s638_s23, 4  ;;  %s495_s4 = int_to_ptr.vmem [resolvable:$false] %s494_s4 }
  0x2c   : > { %s496_s17 = scalar_lea.vmem %s495_s4, 128  ;;  %p497_p9 = scmp.lt.s32.totalorder %s746_s7, %s495_s4 }
  0x2d   : > { %p492_p6 = pnand %p490_p4, %p476_p5  ;;  %p498_p3 = scmp.lt.s32.totalorder %s496_s17, %s489_s3 }
  0x2f   : > { %p493_p12 = pneg %p492_p6  ;;  %p499_p10 = por %p498_p3, %p497_p9 }
  0x31   : > { %p500_p11 = pnand %p499_p10, %p493_p12 }
  0x33   : > { %503 = shalt.err (!%p500_p11)
}
  0x34   : > { %396 = dma.hbm_to_vmem [thread:$0]  (!%p757_p0), %s753_s22, 64, %s746_s7, %s136_s26  }
  0x35   : > { %p917_p1 = scmp.lt.s32.totalorder %s636_s16, 5  ;;  %p918_p2 = scmp.ge.s32.totalorder %s636_s16, 1 }
  0x36   : > { %s802_s18 = scalar_lea.hbm %s907_s1, %s374_s8  ;;  %s920_s23 = sshll.u32 %s733_s29, 2 }
  0x37   : > { %p793_p7 = pnand %p918_p2, %p917_p1  ;;  %s159_s4 = scalar_lea.vmem [#allocation5], %s920_s23 }
  0x38   : > { %s168_s17 = sshll.u32 %s159_s4, 4  ;;  %s156_s7 = scalar_lea.sflag [#allocation6], %s733_s29  ;;  %s169_s17 = int_to_ptr.vmem [resolvable:$true] %s168_s17 }
  0x39   : > { %s919_s27 = scalar_select %p793_p7, 1, 0 }
  0x3a   : > { %s504_s22 = scalar_lea.hbm %s802_s18, 64  ;;  %s509_s8 = scalar_lea.hbm %s907_s1, 256 }
  0x3b   : > { %p505_p9 = scmp.ne.s32.totalorder %s802_s18, %s504_s22  ;;  %p510_p4 = scmp.lt.u32.totalorder %s802_s18, %s907_s1 }
  0x3c   : > { %p511_p6 = scmp.lt.u32.totalorder %s509_s8, %s504_s22  ;;  %p513_p10 = scmp.lt.u32.totalorder %s504_s22, %s802_s18 }
  0x3d   : > { %p507_p12 = pnand %p505_p9, %p476_p5 }
  0x3e   : > { %p512_p3 = por %p511_p6, %p510_p4 }
  0x3f   : > { %p508_p13 = pneg %p507_p12 }
  0x40   : > { %p514_p11 = por %p513_p10, %p512_p3 }
  0x42   : > { %p515_p1 = pnand %p514_p11, %p508_p13 }
  0x44   : > { %518 = shalt.err (!%p515_p1)
}
  0x45   : > { %s519_s29 = scalar_lea.vmem %s169_s17, 64  ;;  %s639_s23 = smov [#allocation5]  }
  0x46   : > { %p520_p2 = scmp.ne.s32.totalorder %s169_s17, %s519_s29  ;;  %s524_s4 = sshll.u32 %s639_s23, 4  ;;  %s525_s4 = int_to_ptr.vmem [resolvable:$false] %s524_s4 }
  0x47   : > { %s526_s5 = scalar_lea.vmem %s525_s4, 128  ;;  %p527_p8 = scmp.lt.s32.totalorder %s169_s17, %s525_s4 }
  0x48   : > { %p522_p9 = pnand %p520_p2, %p476_p5  ;;  %p528_p7 = scmp.lt.s32.totalorder %s526_s5, %s519_s29 }
  0x4a   : > { %p523_p12 = pneg %p522_p9  ;;  %p529_p4 = por %p528_p7, %p527_p8 }
  0x4c   : > { %p530_p6 = pnand %p529_p4, %p523_p12 }
  0x4e   : > { %533 = shalt.err (!%p530_p6)
}
  0x4f   : > { %399 = dma.hbm_to_vmem [thread:$0]  (!%p757_p0), %s802_s18, 64, %s169_s17, %s156_s7  }
  0x50   : > { %p921_p13 = scmp.ne.s32.totalorder %s919_s27, 0 }
  0x51   : > { %s829_s22 = sand.u32 (!%p921_p13), 1, %s612_s10   ;;  %p922_p8 = scmp.ne.s32.totalorder (!%p921_p13), %s913_s24, 0 }
  0x52   : > { %177 = sbr.rel (%p921_p13) target bundleno = 163 (0xa3), region = 28  ;;  %s832_s26 = sshll.u32 (!%p921_p13), %s829_s22, 2 }
  0x53   : > { %s180_s8 = scalar_lea.sflag (!%p921_p13), [#allocation3], %s829_s22  ;;  %s183_s3 = scalar_lea.vmem (!%p921_p13), [#allocation2], %s832_s26 }
  0x59   : > { %595 = dma.done.wait (%p922_p8), %s180_s8, 64  }
  0x5a   : > { %597 = vsyncadd (%p922_p8), %s180_s8, 4294967232  ;;  %s189_s21 = scalar_lea.sflag [#allocation6], %s829_s22  ;;  %s192_s27 = scalar_lea.vmem [#allocation5], %s832_s26 }
  0x5b   : > { %599 = dma.done.wait (%p922_p8), %s189_s21, 64  }
  0x5c   : > { %601 = vsyncadd (%p922_p8), %s189_s21, 4294967232  ;;  %vm220_vm0 = vcmask 1043456   ;;  %v218_v0 = vld [vmem:[%s183_s3] sm:$0xf]  ;;  %s383_s24 = sshll.u32 %s624_s13, 1  ;;  %s217_s17 = scalar_lea.vmem [#allocation7], %s832_s26 }
  0x5d   : > { %v221_v1 = vsel %vm220_vm0, %v218_v0, -inf  ;;  %s254_s18 = sadd.s32 %s620_s12, %s383_s24  ;;  %v219_v19 = vld [vmem:[%s192_s27] sm:$0xf]  ;;  %s258_s7 = sshll.u32 %s217_s17, 4  ;;  %s849_s7 = int_to_ptr.vmem [resolvable:$true] %s258_s7 }
  0x5e   : > { %v222_v2 = vrot.slane %v221_v1, 4  ;;  %s384_s6 = sshll.u32 %s254_s18, 6  ;;  %s243_s13 = scalar_lea.sflag [#allocation4], %s829_s22 }
  0x5f   : > { %s854_s4 = scalar_lea.hbm %s908_s2, %s384_s6  ;;  %s534_s12 = scalar_lea.vmem %s849_s7, 64 }
  0x60   : > { %v223_v3 = vmax.f32 %v221_v1, %v222_v2  ;;  %p535_p0 = scmp.ne.s32.totalorder %s849_s7, %s534_s12  ;;  %p923_p5 = scmp.ne.s32.totalorder %s914_s25, 0 }
  0x61   : > { %s640_s5 = smov [#allocation7]  }
  0x62   : > { %v224_v4 = vrot.slane %v223_v3, 2  ;;  %p536_p7 = pnand %p535_p0, %p923_p5  ;;  %s538_s26 = sshll.u32 %s640_s5, 4  ;;  %s539_s26 = int_to_ptr.vmem [resolvable:$false] %s538_s26 }
  0x63   : > { %s540_s8 = scalar_lea.vmem %s539_s26, 128  ;;  %p541_p10 = scmp.lt.s32.totalorder %s849_s7, %s539_s26 }
  0x64   : > { %v225_v5 = vmax.f32 %v223_v3, %v224_v4  ;;  %p537_p3 = pneg %p536_p7  ;;  %p542_p11 = scmp.lt.s32.totalorder %s540_s8, %s534_s12 }
  0x66   : > { %v226_v6 = vrot.slane %v225_v5, 1  ;;  %p543_p1 = por %p542_p11, %p541_p10 }
  0x68   : > { %v227_v7 = vmax.f32 %v225_v5, %v226_v6  ;;  %p544_p2 = pnand %p543_p1, %p537_p3 }
  0x6a   : > { %v228_v8 = vsub.f32 %v218_v0, %v227_v7 }
  0x6c   : > { %v229_v9 = vmul.f32 1.442695, %v228_v8 }
  0x6e   : > { %470 = vpow2.f32 %v229_v9 }
  0x78   : > { %v471_v10 = vpop.eup %470 }
  0x79   : > { %v231_v11 = vsel %vm220_vm0, %v471_v10, 0.0 }
  0x7a   : > { %v232_v12 = vrot.slane %v231_v11, 4 }
  0x7c   : > { %v233_v13 = vadd.f32 %v232_v12, %v231_v11 }
  0x7e   : > { %v234_v14 = vrot.slane %v233_v13, 2 }
  0x80   : > { %v235_v15 = vadd.f32 %v234_v14, %v233_v13 }
  0x82   : > { %v236_v16 = vrot.slane %v235_v15, 1 }
  0x84   : > { %v237_v17 = vadd.f32 %v236_v16, %v235_v15 }
  0x86   : > { %472 = vrcp.f32 %v237_v17 }
  0x90   : > { %v473_v18 = vpop.eup %472 }
  0x91   : > { %v239_v20 = vmul.f32 %v473_v18, %v471_v10 }
  0x93   : > { %v240_v21 = vmul.f32 %v239_v20, %v219_v19 }
  0x95   : > { %241 = vst [vmem:[%s217_s17] sm:$0xf] %v240_v21 }
  0x96   : > { %547 = shalt.err (!%p544_p2)
}
  0x97   : > { %s548_s22 = scalar_lea.hbm %s854_s4, 64  ;;  %s552_s27 = scalar_lea.hbm %s908_s2, 256 }
  0x98   : > { %p549_p9 = scmp.ne.s32.totalorder %s854_s4, %s548_s22  ;;  %p553_p6 = scmp.lt.u32.totalorder %s854_s4, %s908_s2 }
  0x99   : > { %p554_p13 = scmp.lt.u32.totalorder %s552_s27, %s548_s22  ;;  %p556_p0 = scmp.lt.u32.totalorder %s548_s22, %s854_s4 }
  0x9a   : > { %p550_p12 = pnand %p549_p9, %p923_p5 }
  0x9b   : > { %p555_p8 = por %p554_p13, %p553_p6 }
  0x9c   : > { %p551_p4 = pneg %p550_p12 }
  0x9d   : > { %p557_p7 = por %p556_p0, %p555_p8 }
  0x9f   : > { %p558_p3 = pnand %p557_p7, %p551_p4 }
  0xa1   : > { %561 = shalt.err (!%p558_p3)
}
  0xa2   : > { %391 = dma.vmem_to_hbm [thread:$0]  (%p923_p5), %s849_s7, 64, %s854_s4, %s243_s13  }
  0xa3 PF: > { %p405_p10 = scmp.ge.s32.totalorder %s636_s16, 2  ;;  %s270_s17 = sand.u32 1, %s608_s9  }
  0xa4   : > { %p924_p11 = scmp.ne.s32.totalorder %s915_s28, 0  ;;  %s271_s6 = scalar_lea.sflag [#allocation4], %s270_s17 }
  0xa6   : > { %p401_p1 = pnand %p405_p10, %p924_p11 }
  0xa8   : > { %603 = dma.done.wait (!%p401_p1), %s271_s6, 64  }
  0xa9   : > { %605 = vsyncadd (!%p401_p1), %s271_s6, 4294967232  ;;  %s21_s16 = sadd.s32 1, %s636_s16   ;;  %s925_s9 = smov %s612_s10 }
  0xaa   : > { %p18_p2 = scmp.ge.s32.totalorder %s21_s16, 6   ;;  %s926_s10 = smov %s616_s11 }
  0xab   : > { %s927_s11 = smov %s736_s30  ;;  %s928_s12 = smov %s628_s14 }
  0xac   : > { %s929_s13 = smov %s632_s15  ;;  %s930_s14 = smov %s933_s19 }
  0xad   : > { %s931_s15 = smov %s937_s20  ;;  %20 = sbr.rel (!%p18_p2) target bundleno = 9 (0x9), region = 86 }
  0xb4   :  { %276 = vsyncpa [#allocation3], 1 }
  0xb5   :  { %278 = vsyncpa [#allocation3 + $0x1], 1 }
  0xb6   :  { %279 = vsyncpa [#allocation6], 1 }
  0xb7   :  { %281 = vsyncpa [#allocation6 + $0x1], 1 }
  0xb8   :  { %282 = vsyncpa [#allocation4], 1 }
  0xb9   :  { %284 = vsyncpa [#allocation4 + $0x1], 1 }

</bundles_post_ra>
